<compile_context>
chip_gen: v5e
topology: v5e:2x2
jax: 0.10.0
libtpu: 0.0.40
codegen_flags: <defaults>
</compile_context>

<pallas_src>
import functools

import jax
import jax.numpy as jnp
from jax.experimental import pallas as pl
from jax.experimental.pallas import tpu as pltpu


def _l_c_block(x_ref, t_ref, *, rows, tb, l_vec, masked,
               m_plus, m_minus, loss_lambda):
    """Per-pixel margin loss L_c for one (tb, S) block."""
    t = t_ref[...].astype(jnp.float32)
    s = t.shape[-1]

    if len(x_ref.shape) == 2:
        # (tb, l_vec*S): lane-aligned static slices -> squared norm is pure
        # VPU adds (no cross-sublane XLU reduce).
        x = x_ref[...].astype(jnp.float32)
        x0 = x[:, :s]
        v_sq = x0 * x0
        for l in range(1, l_vec):
            xl = x[:, l * s:(l + 1) * s]
            v_sq = v_sq + xl * xl
    else:
        # (tb, l_vec, S) fallback when S % 128 != 0: cross-sublane reduce.
        x = x_ref[...].astype(jnp.float32)
        v_sq = jnp.sum(x * x, axis=1)

    v_mag = jnp.sqrt(v_sq)                                  # (tb, S)
    max_l = jnp.maximum(m_plus - v_mag, 0.0) ** 2
    max_r = jnp.maximum(v_mag - m_minus, 0.0) ** 2
    l_c = t * max_l + loss_lambda * (1.0 - t) * max_r

    if masked:
        # Ragged-tail rows of the boundary block read undefined data; select 0
        # there (selection, not multiplication, so garbage NaN/Inf is safe).
        row = (pl.program_id(0) * tb
               + jax.lax.broadcasted_iota(jnp.int32, (tb, 1), 0))
        l_c = jnp.where(row < rows, l_c, 0.0)
    return l_c


def _margin_loss_sum_kernel(x_ref, t_ref, out_ref, **kw):
    l_c = _l_c_block(x_ref, t_ref, **kw)
    tb, s = l_c.shape
    # Fold the tb rows down to 8 sublanes; the tiny cross-lane reduce over the
    # (num_blocks, 8, S) partials happens once, outside the kernel, in JAX.
    out_ref[...] = jnp.sum(l_c.reshape(tb // 8, 8, s), axis=0, keepdims=True)


def _margin_loss_map_kernel(x_ref, t_ref, out_ref, **kw):
    out_ref[...] = _l_c_block(x_ref, t_ref, **kw)


def margin_loss(inputs, targets, mask=None, *, num_keypoints, l_vec,
                size_average=True, m_plus=0.9, m_minus=0.1, loss_lambda=1.0):
    """Pallas equivalent of MarginLoss.forward (mask is unused, as in torch)."""
    del mask  # unused in the torch reference forward
    B, C, H, W = inputs.shape
    K = num_keypoints + 1
    assert C == K * l_vec, f"channel dim {C} != (K+1)*l_vec = {K * l_vec}"
    S = H * W
    rows = B * K

    # Sub-32-bit dtypes pack along sublanes; make tb a multiple of the widest
    # pack so no block has half-filled sublane tiles.
    pack = max(8,
               32 // inputs.dtype.itemsize,
               32 // targets.dtype.itemsize)

    # Per-step x-tile budget: larger on newer chips (faster HBM per TC),
    # conservative on v5e (16 MiB scoped-VMEM default, double-buffered).
    try:
        kind = jax.devices()[0].device_kind.lower()
    except Exception:
        kind = ""
    if "v7" in kind:
        budget = 6 << 20
    elif "v6" in kind:
        budget = 3 << 20
    else:
        budget = 2 << 20

    x_row_bytes = l_vec * S * inputs.dtype.itemsize
    tb = max(pack, (budget // max(x_row_bytes, 1)) // pack * pack)
    # Guarantee >= 2 grid blocks when rows allow, so the "parallel" grid axis
    # can feed both v7x TensorCores.
    if rows >= 2 * pack:
        tb = min(tb, max(pack, (rows // 2) // pack * pack))
    tb = min(tb, pl.cdiv(rows, pack) * pack)
    num_blocks = pl.cdiv(rows, tb)

    # Flatten x to (rows, l_vec*S) when the slices are lane-aligned.
    flat = (S % 128 == 0)
    if flat:
        x = inputs.reshape(rows, l_vec * S)          # contiguous reshape: free
        x_spec = pl.BlockSpec((tb, l_vec * S), lambda i: (i, 0))
    else:
        x = inputs.reshape(rows, l_vec, S)
        x_spec = pl.BlockSpec((tb, l_vec, S), lambda i: (i, 0, 0))
    t = targets.reshape(rows, S)
    t_spec = pl.BlockSpec((tb, S), lambda i: (i, 0))

    kern_kw = dict(rows=rows, tb=tb, l_vec=l_vec, masked=(rows % tb != 0),
                   m_plus=m_plus, m_minus=m_minus, loss_lambda=loss_lambda)
    in_bytes = rows * (l_vec * inputs.dtype.itemsize
                       + targets.dtype.itemsize) * S
    flops = rows * S * (2 * l_vec + 6)
    transcendentals = rows * S
    compiler_params = pltpu.CompilerParams(dimension_semantics=("parallel",))

    if size_average:
        partials = pl.pallas_call(
            functools.partial(_margin_loss_sum_kernel, **kern_kw),
            out_shape=jax.ShapeDtypeStruct((num_blocks, 8, S), jnp.float32),
            grid_spec=pltpu.PrefetchScalarGridSpec(
                num_scalar_prefetch=0,
                grid=(num_blocks,),
                in_specs=[x_spec, t_spec],
                out_specs=pl.BlockSpec((1, 8, S), lambda i: (i, 0, 0)),
            ),
            compiler_params=compiler_params,
            cost_estimate=pl.CostEstimate(
                flops=flops, transcendentals=transcendentals,
                bytes_accessed=in_bytes + num_blocks * 8 * S * 4),
        )(x, t)
        return jnp.sum(partials) * (1.0 / float(rows * S))

    # size_average=False: full per-pixel loss map, shaped (B, K+1, H, W).
    padded_rows = num_blocks * tb
    l_c = pl.pallas_call(
        functools.partial(_margin_loss_map_kernel, **kern_kw),
        out_shape=jax.ShapeDtypeStruct((padded_rows, S), jnp.float32),
        grid_spec=pltpu.PrefetchScalarGridSpec(
            num_scalar_prefetch=0,
            grid=(num_blocks,),
            in_specs=[x_spec, t_spec],
            out_specs=pl.BlockSpec((tb, S), lambda i: (i, 0)),
        ),
        compiler_params=compiler_params,
        cost_estimate=pl.CostEstimate(
            flops=flops, transcendentals=transcendentals,
            bytes_accessed=in_bytes + padded_rows * S * 4),
    )(x, t)
    return l_c[:rows].reshape(B, K, H, W)


# ----------------------------- pure-JAX reference ---------------------------


def _reference_map(inputs, targets, num_keypoints, l_vec):
    B, C, H, W = inputs.shape
    K = num_keypoints + 1
    x5 = inputs.astype(jnp.float32).reshape(B, K, l_vec, H, W)
    v_mag = jnp.sqrt((x5 ** 2).sum(axis=2))
    max_l = jnp.maximum(0.9 - v_mag, 0.0) ** 2
    max_r = jnp.maximum(v_mag - 0.1, 0.0) ** 2
    t = targets.astype(jnp.float32)
    return t * max_l + 1.0 * (1.0 - t) * max_r


def _reference(inputs, targets, num_keypoints, l_vec):
    return _reference_map(inputs, targets, num_keypoints, l_vec).mean()


if __name__ == "__main__":
    def _run_case(key, B, H, W, num_keypoints, l_vec):
        K = num_keypoints + 1
        k1, k2 = jax.random.split(key)
        inputs = jax.random.normal(k1, (B, K * l_vec, H, W), dtype=jnp.float32)
        targets = jax.random.bernoulli(k2, 0.2, (B, K, H, W)).astype(jnp.float32)
        mask = jnp.ones((B, K, H, W), dtype=jnp.float32)  # unused by forward

        loss = jax.block_until_ready(
            margin_loss(inputs, targets, mask,
                        num_keypoints=num_keypoints, l_vec=l_vec))
        ref = _reference(inputs, targets, num_keypoints, l_vec)
        assert jnp.allclose(loss, ref, rtol=1e-5, atol=1e-6), (loss, ref)

        l_c = jax.block_until_ready(
            margin_loss(inputs, targets, mask,
                        num_keypoints=num_keypoints, l_vec=l_vec,
                        size_average=False))
        ref_map = _reference_map(inputs, targets, num_keypoints, l_vec)
        assert jnp.allclose(l_c, ref_map, rtol=1e-5, atol=1e-5)

    root = jax.random.PRNGKey(0)
    k_a, k_b = jax.random.split(root)
    # num_keypoints=3 -> K=4, rows=8: tile divides rows exactly.
    _run_case(k_a, B=2, H=16, W=16, num_keypoints=3, l_vec=8)
    # num_keypoints=4 -> K=5, rows=10: exercises the in-kernel ragged-tail mask.
    _run_case(k_b, B=2, H=16, W=16, num_keypoints=4, l_vec=8)
    print("KERNEL_OK")
</pallas_src>

<mosaic_0001>
module attributes {stable_mosaic.version = 11 : i64} {
  func.func @_margin_loss_sum_kernel(%arg0: i32, %arg1: memref<8x2048xf32, #tpu.memory_space<vmem>>, %arg2: memref<8x256xf32, #tpu.memory_space<vmem>>, %arg3: memref<1x8x256xf32, #tpu.memory_space<vmem>>) attributes {dimension_semantics = [#tpu.dimension_semantics<parallel>], iteration_bounds = array<i64: 1>, scalar_prefetch = 0 : i64, scratch_operands = 0 : i64, tpu.core_type = #tpu.core_type<tc>, window_params = [{transform_indices = @transform_0, window_bounds = array<i64: 8, 2048>}, {transform_indices = @transform_1, window_bounds = array<i64: 8, 256>}, {transform_indices = @transform_2, window_bounds = array<i64: 1, 8, 256>}]} {
    %c0 = arith.constant 0 : index
    %c0_0 = arith.constant 0 : index
    %0 = vector.load %arg2[%c0, %c0_0] : memref<8x256xf32, #tpu.memory_space<vmem>>, vector<8x256xf32>
    %c0_1 = arith.constant 0 : index
    %c0_2 = arith.constant 0 : index
    %1 = vector.load %arg1[%c0_1, %c0_2] : memref<8x2048xf32, #tpu.memory_space<vmem>>, vector<8x2048xf32>
    %2 = vector.extract_strided_slice %1 {offsets = [0, 0], sizes = [8, 256], strides = [1, 1]} : vector<8x2048xf32> to vector<8x256xf32>
    %3 = arith.mulf %2, %2 : vector<8x256xf32>
    %4 = vector.extract_strided_slice %1 {offsets = [0, 256], sizes = [8, 256], strides = [1, 1]} : vector<8x2048xf32> to vector<8x256xf32>
    %5 = arith.mulf %4, %4 : vector<8x256xf32>
    %6 = arith.addf %3, %5 : vector<8x256xf32>
    %7 = vector.extract_strided_slice %1 {offsets = [0, 512], sizes = [8, 256], strides = [1, 1]} : vector<8x2048xf32> to vector<8x256xf32>
    %8 = arith.mulf %7, %7 : vector<8x256xf32>
    %9 = arith.addf %6, %8 : vector<8x256xf32>
    %10 = vector.extract_strided_slice %1 {offsets = [0, 768], sizes = [8, 256], strides = [1, 1]} : vector<8x2048xf32> to vector<8x256xf32>
    %11 = arith.mulf %10, %10 : vector<8x256xf32>
    %12 = arith.addf %9, %11 : vector<8x256xf32>
    %13 = vector.extract_strided_slice %1 {offsets = [0, 1024], sizes = [8, 256], strides = [1, 1]} : vector<8x2048xf32> to vector<8x256xf32>
    %14 = arith.mulf %13, %13 : vector<8x256xf32>
    %15 = arith.addf %12, %14 : vector<8x256xf32>
    %16 = vector.extract_strided_slice %1 {offsets = [0, 1280], sizes = [8, 256], strides = [1, 1]} : vector<8x2048xf32> to vector<8x256xf32>
    %17 = arith.mulf %16, %16 : vector<8x256xf32>
    %18 = arith.addf %15, %17 : vector<8x256xf32>
    %19 = vector.extract_strided_slice %1 {offsets = [0, 1536], sizes = [8, 256], strides = [1, 1]} : vector<8x2048xf32> to vector<8x256xf32>
    %20 = arith.mulf %19, %19 : vector<8x256xf32>
    %21 = arith.addf %18, %20 : vector<8x256xf32>
    %22 = vector.extract_strided_slice %1 {offsets = [0, 1792], sizes = [8, 256], strides = [1, 1]} : vector<8x2048xf32> to vector<8x256xf32>
    %23 = arith.mulf %22, %22 : vector<8x256xf32>
    %24 = arith.addf %21, %23 : vector<8x256xf32>
    %25 = math.sqrt %24 : vector<8x256xf32>
    %cst = arith.constant 0.899999976 : f32
    %26 = vector.broadcast %cst : f32 to vector<8x256xf32>
    %27 = arith.subf %26, %25 : vector<8x256xf32>
    %cst_3 = arith.constant 0.000000e+00 : f32
    %28 = vector.broadcast %cst_3 : f32 to vector<8x256xf32>
    %29 = arith.maximumf %27, %28 : vector<8x256xf32>
    %30 = arith.mulf %29, %29 : vector<8x256xf32>
    %cst_4 = arith.constant 1.000000e-01 : f32
    %31 = vector.broadcast %cst_4 : f32 to vector<8x256xf32>
    %32 = arith.subf %25, %31 : vector<8x256xf32>
    %cst_5 = arith.constant 0.000000e+00 : f32
    %33 = vector.broadcast %cst_5 : f32 to vector<8x256xf32>
    %34 = arith.maximumf %32, %33 : vector<8x256xf32>
    %35 = arith.mulf %34, %34 : vector<8x256xf32>
    %36 = arith.mulf %0, %30 : vector<8x256xf32>
    %cst_6 = arith.constant 1.000000e+00 : f32
    %37 = vector.broadcast %cst_6 : f32 to vector<8x256xf32>
    %38 = arith.subf %37, %0 : vector<8x256xf32>
    %cst_7 = arith.constant 1.000000e+00 : f32
    %39 = vector.broadcast %cst_7 : f32 to vector<8x256xf32>
    %40 = arith.mulf %39, %38 : vector<8x256xf32>
    %41 = arith.mulf %40, %35 : vector<8x256xf32>
    %42 = arith.addf %36, %41 : vector<8x256xf32>
    %43 = vector.shape_cast %42 : vector<8x256xf32> to vector<1x8x256xf32>
    %cst_8 = arith.constant dense<0.000000e+00> : vector<8x256xf32>
    %44 = vector.multi_reduction <add>, %43, %cst_8 [0] : vector<1x8x256xf32> to vector<8x256xf32>
    %45 = vector.shape_cast %44 : vector<8x256xf32> to vector<1x8x256xf32>
    %c0_9 = arith.constant 0 : index
    %c0_10 = arith.constant 0 : index
    %c0_11 = arith.constant 0 : index
    %46 = vector.load %arg3[%c0_9, %c0_10, %c0_11] : memref<1x8x256xf32, #tpu.memory_space<vmem>>, vector<1x8x256xf32>
    tpu.vector_store %arg3[%c0_9, %c0_10, %c0_11], %45 {strides = array<i32>} : memref<1x8x256xf32, #tpu.memory_space<vmem>>, vector<1x8x256xf32>,
    return
  }
  func.func @transform_0(%arg0: i32) -> (i32, i32) {
    %c0_i32 = arith.constant 0 : i32
    %c0_i32_0 = arith.constant 0 : i32
    return %arg0, %c0_i32 : i32, i32
  }
  func.func @transform_1(%arg0: i32) -> (i32, i32) {
    %c0_i32 = arith.constant 0 : i32
    %c0_i32_0 = arith.constant 0 : i32
    return %arg0, %c0_i32 : i32, i32
  }
  func.func @transform_2(%arg0: i32) -> (i32, i32, i32) {
    %c0_i32 = arith.constant 0 : i32
    %c0_i32_0 = arith.constant 0 : i32
    %c0_i32_1 = arith.constant 0 : i32
    return %arg0, %c0_i32, %c0_i32_0 : i32, i32, i32
  }
}

</mosaic_0001>

<bundles_post_ra>
// kernel: tpu_custom_call.1
= control target key start
LH: loop header
LB: loop body
LE: loop exit
PB: predicated region body
PF: predicated region fallthrough
CT: control target
= control target key end

     0   :  { %7 = vsyncpa [#allocation3], 0  ;;  %s268_s0 = inlined_call_operand.hbm [shape: f32[8,2048], index: 0, kind: input, shape index: {}]   ;;  %s269_s1 = inlined_call_operand.hbm [shape: f32[8,256], index: 1, kind: input, shape index: {}]   ;;  %s270_s2 = inlined_call_operand.hbm [shape: f32[1,8,256], index: 2, kind: output, shape index: {}]  }
   0x1   :  { %8 = vsyncpa [#allocation6], 0 }
   0x2   :  { %9 = vsyncpa [#allocation4], 0  ;;  %s15_s11 = sshll.u32 %s268_s0, 4  ;;  %s241_s12 = smov [#allocation2]   ;;  %s16_s11 = int_to_ptr.hbm [resolvable:$true] %s15_s11 }
   0x3   :  { %s17_s13 = sshll.u32 %s241_s12, 4  ;;  %s26_s16 = sshll.u32 %s269_s1, 4  ;;  %s18_s13 = int_to_ptr.vmem [resolvable:$true] %s17_s13  ;;  %s27_s16 = int_to_ptr.hbm [resolvable:$true] %s26_s16 }
   0x4   :  { %20 = dma.hbm_to_vmem [thread:$0]  %s16_s11, 2048, %s18_s13, [#allocation3]  }
   0x5   :  { %s242_s17 = smov [#allocation5]  }
   0x6   :  { %s28_s18 = sshll.u32 %s242_s17, 4  ;;  %s29_s18 = int_to_ptr.vmem [resolvable:$true] %s28_s18 }
   0x7   :  { %31 = dma.hbm_to_vmem [thread:$0]  %s27_s16, 256, %s29_s18, [#allocation6]  }
   0x8   :  { %235 = dma.done.wait [#allocation3], 2048  }
   0x9   :  { %236 = vsyncadd [#allocation3], 4294965248 }
   0xa   :  { %237 = dma.done.wait [#allocation6], 256  }
   0xb   :  { %238 = vsyncadd [#allocation6], 4294967040  ;;  %v42_v0 = vld [vmem:[#allocation2] sm:$0xff]  ;;  %v44_v1 = vld [vmem:[#allocation2 + $0x10] sm:$0xff]  ;;  %s243_s0 = smov [#allocation7]   ;;  %s143_s21 = sshll.u32 %s270_s2, 4  ;;  %s144_s21 = int_to_ptr.hbm [resolvable:$true] %s143_s21 }
   0xc   :  { %v46_v2 = vld [vmem:[#allocation2 + $0x20] sm:$0xff]  ;;  %v48_v3 = vld [vmem:[#allocation2 + $0x30] sm:$0xff]  ;;  %v58_v4 = vmul.f32 %v42_v0, %v42_v0  ;;  %v60_v5 = vmul.f32 %v44_v1, %v44_v1  ;;  %v43_v10 = vld [vmem:[#allocation2 + $0x8] sm:$0xff]  ;;  %s141_s1 = sshll.u32 %s243_s0, 4  ;;  %s142_s1 = int_to_ptr.vmem [resolvable:$true] %s141_s1 }
   0xd   :  { %v50_v6 = vld [vmem:[#allocation2 + $0x40] sm:$0xff]  ;;  %v64_v7 = vmul.f32 %v46_v2, %v46_v2  ;;  %v68_v9 = vmul.f32 %v48_v3, %v48_v3  ;;  %v45_v11 = vld [vmem:[#allocation2 + $0x18] sm:$0xff]  ;;  %v47_v12 = vld [vmem:[#allocation2 + $0x28] sm:$0xff]  ;;  %v59_v15 = vmul.f32 %v43_v10, %v43_v10 }
   0xe   :  { %v62_v8 = vadd.f32 %v60_v5, %v58_v4  ;;  %v52_v13 = vld [vmem:[#allocation2 + $0x50] sm:$0xff]  ;;  %v49_v14 = vld [vmem:[#allocation2 + $0x38] sm:$0xff]  ;;  %v61_v16 = vmul.f32 %v45_v11, %v45_v11  ;;  %v65_v17 = vmul.f32 %v47_v12, %v47_v12  ;;  %v72_v19 = vmul.f32 %v50_v6, %v50_v6  ;;  %v51_v20 = vld [vmem:[#allocation2 + $0x48] sm:$0xff] }
   0xf   :  { %v54_v21 = vld [vmem:[#allocation2 + $0x60] sm:$0xff]  ;;  %v69_v23 = vmul.f32 %v49_v14, %v49_v14  ;;  %v76_v25 = vmul.f32 %v52_v13, %v52_v13  ;;  %v53_v26 = vld [vmem:[#allocation2 + $0x58] sm:$0xff]  ;;  %v56_v27 = vld [vmem:[#allocation2 + $0x70] sm:$0xff]  ;;  %v73_v29 = vmul.f32 %v51_v20, %v51_v20 }
  0x10   :  { %v66_v18 = vadd.f32 %v64_v7, %v62_v8  ;;  %v63_v22 = vadd.f32 %v61_v16, %v59_v15  ;;  %v80_v31 = vmul.f32 %v54_v21, %v54_v21  ;;  %v55_v32 = vld [vmem:[#allocation2 + $0x68] sm:$0xff]  ;;  %v77_v34 = vmul.f32 %v53_v26, %v53_v26  ;;  %v57_v37 = vld [vmem:[#allocation2 + $0x78] sm:$0xff]  ;;  %v40_v62 = vld [vmem:[#allocation5] sm:$0xff] }
  0x11   :  { %v84_v36 = vmul.f32 %v56_v27, %v56_v27  ;;  %v81_v39 = vmul.f32 %v55_v32, %v55_v32  ;;  %v85_v42 = vmul.f32 %v57_v37, %v57_v37  ;;  %v126_v6 = vsub.f32 1.0, %v40_v62  ;;  %v41_v7 = vld [vmem:[#allocation5 + $0x8] sm:$0xff] }
  0x12   :  { %v70_v24 = vadd.f32 %v68_v9, %v66_v18  ;;  %v67_v28 = vadd.f32 %v65_v17, %v63_v22  ;;  %v127_v15 = vsub.f32 1.0, %v41_v7 }
  0x14   :  { %v74_v30 = vadd.f32 %v72_v19, %v70_v24  ;;  %v71_v33 = vadd.f32 %v69_v23, %v67_v28 }
  0x16   :  { %v78_v35 = vadd.f32 %v76_v25, %v74_v30  ;;  %v75_v38 = vadd.f32 %v73_v29, %v71_v33 }
  0x18   :  { %v82_v40 = vadd.f32 %v80_v31, %v78_v35  ;;  %v79_v41 = vadd.f32 %v77_v34, %v75_v38 }
  0x1a   :  { %v86_v43 = vadd.f32 %v84_v36, %v82_v40  ;;  %v83_v44 = vadd.f32 %v81_v39, %v79_v41 }
  0x1c   :  { %159 = vrsqrt.f32 %v86_v43  ;;  %v87_v45 = vadd.f32 %v85_v42, %v83_v44  ;;  %vm95_vm0 = vcmp.eq.f32.partialorder %v86_v43, inf  ;;  %v98_v56 = vand.u32 2147483648, %v86_v43 }
  0x1d   :  { %vm97_vm1 = vcmp.eq.f32.partialorder %v86_v43, 0.0 }
  0x1e   :  { %161 = vrsqrt.f32 %v87_v45  ;;  %vm107_vm2 = vcmp.eq.f32.partialorder %v87_v45, inf  ;;  %v110_v61 = vand.u32 2147483648, %v87_v45  ;;  %vm109_vm3 = vcmp.eq.f32.partialorder %v87_v45, 0.0 }
  0x22   :  { %v160_v46 = vpop.eup %159 }
  0x23   :  { %v89_v47 = vmul.f32 %v160_v46, %v86_v43 }
  0x24   :  { %v162_v48 = vpop.eup %161 }
  0x25   :  { %v90_v49 = vmul.f32 %v160_v46, %v89_v47  ;;  %v101_v50 = vmul.f32 %v162_v48, %v87_v45 }
  0x27   :  { %v91_v51 = vmul.f32 0.5, %v90_v49  ;;  %v102_v52 = vmul.f32 %v162_v48, %v101_v50 }
  0x29   :  { %v92_v53 = vsub.f32 1.5, %v91_v51  ;;  %v103_v54 = vmul.f32 0.5, %v102_v52 }
  0x2b   :  { %v93_v55 = vmul.f32 %v160_v46, %v92_v53  ;;  %v104_v57 = vsub.f32 1.5, %v103_v54 }
  0x2d   :  { %v94_v58 = vmul.f32 %v93_v55, %v86_v43  ;;  %v105_v59 = vmul.f32 %v162_v48, %v104_v57 }
  0x2f   :  { %v96_v60 = vsel %vm95_vm0, %v86_v43, %v94_v58  ;;  %v106_v0 = vmul.f32 %v105_v59, %v87_v45 }
  0x30   :  { %v99_v63 = vsel %vm97_vm1, %v98_v56, %v96_v60 }
  0x31   :  { %v112_v1 = vsub.f32 0.9, %v99_v63  ;;  %v154_v2 = vadd.f32 -0.1, %v99_v63  ;;  %v108_v3 = vsel %vm107_vm2, %v87_v45, %v106_v0 }
  0x32   :  { %v111_v8 = vsel %vm109_vm3, %v110_v61, %v108_v3 }
  0x33   :  { %v114_v4 = vmax.f32 %v112_v1, 0.0  ;;  %v120_v5 = vmax.f32 %v154_v2, 0.0  ;;  %v113_v9 = vsub.f32 0.9, %v111_v8  ;;  %v155_v10 = vadd.f32 -0.1, %v111_v8 }
  0x35   :  { %v116_v11 = vmul.f32 %v114_v4, %v114_v4  ;;  %v122_v12 = vmul.f32 %v120_v5, %v120_v5  ;;  %v115_v13 = vmax.f32 %v113_v9, 0.0  ;;  %v121_v14 = vmax.f32 %v155_v10, 0.0 }
  0x37   :  { %v124_v16 = vmul.f32 %v116_v11, %v40_v62  ;;  %v128_v17 = vmul.f32 %v126_v6, %v122_v12  ;;  %v117_v18 = vmul.f32 %v115_v13, %v115_v13  ;;  %v123_v19 = vmul.f32 %v121_v14, %v121_v14 }
  0x39   :  { %v130_v20 = vadd.f32 %v128_v17, %v124_v16  ;;  %v125_v21 = vmul.f32 %v117_v18, %v41_v7  ;;  %v129_v22 = vmul.f32 %v127_v15, %v123_v19 }
  0x3b   :  { %134 = vst [vmem:[#allocation7] sm:$0xff] %v130_v20  ;;  %v131_v23 = vadd.f32 %v129_v22, %v125_v21 }
  0x3d   :  { %135 = vst [vmem:[#allocation7 + $0x8] sm:$0xff] %v131_v23 }
  0x3e   :  { %146 = dma.vmem_to_hbm [thread:$0]  %s142_s1, 256, %s144_s21, [#allocation4]  }
  0x3f   :  { %239 = dma.done.wait [#allocation4], 256  }
  0x40   :  { %240 = vsyncadd [#allocation4], 4294967040 }
  0x41   :  { %151 = vsyncpa [#allocation3], 1 }
  0x42   :  { %152 = vsyncpa [#allocation6], 1 }
  0x43   :  { %153 = vsyncpa [#allocation4], 1 }

</bundles_post_ra>
